<compile_context>
chip_gen: v6e
topology: v6e:2x2x1
jax: 0.10.0
libtpu: 0.0.40
codegen_flags: <defaults>
</compile_context>

<pallas_src>
import functools

import jax
import jax.numpy as jnp
from jax.experimental import pallas as pl
from jax.experimental.pallas import tpu as pltpu

_LANES = 1024            # lane-dense minor dim (multiple of 128)
_MAX_BLOCK_ROWS = 1024   # (1024, 1024) f32 tile = 4 MiB per buffer


def _round_up(n, m):
    return -(-n // m) * m


def _bits_to_uniform(bits):
    """Raw 32-bit PRNG output -> uniform float32 in [0, 1) (mantissa trick)."""
    u32 = pltpu.bitcast(bits, jnp.uint32)
    mant = (u32 >> jnp.uint32(9)) | jnp.uint32(0x3F800000)   # float in [1, 2)
    return pltpu.bitcast(mant, jnp.float32) - jnp.float32(1.0)


def _train_noise_prng_kernel(seed_ref, x_ref, o_ref, *, eps):
    """TPU path: in-kernel PRNG, single logistic draw folded into a sign test.

    Exactly equivalent to (x + log((u+eps)/(1-u+eps)) >= 0) but with a single
    EUP exp per element, no log, no divide, and no overflow (exp(-|x|) <= 1).
    """
    # Per-block PRNG stream (required once the grid is tiled).
    pltpu.prng_seed(seed_ref[0], pl.program_id(0))
    u = _bits_to_uniform(pltpu.prng_random_bits(x_ref.shape))
    x = x_ref[...]
    e = jnp.exp(-jnp.abs(x))          # (0, 1], no overflow -> no NaN
    pos = x >= 0.0
    a = u + eps                        # > 0
    b = (1.0 - u) + eps                # > 0
    lhs = jnp.where(pos, a, a * e)
    rhs = jnp.where(pos, b * e, b)
    o_ref[...] = (lhs >= rhs).astype(jnp.float32)


def _train_noise_host_kernel(x_ref, noise_ref, o_ref):
    """Fallback path (noise drawn outside the kernel with jax.random)."""
    o_ref[...] = (x_ref[...] + noise_ref[...] >= 0.0).astype(jnp.float32)


def _sign_kernel(x_ref, o_ref):
    """Eval path AND training-without-noise path: (x >= 0).float()."""
    o_ref[...] = (x_ref[...] >= 0.0).astype(jnp.float32)


def _lane_dense_view(x):
    """Flatten to a lane-dense (rows, _LANES) f32 view.

    Pads at most one partial lane-row (only when total % _LANES != 0), so the
    common case adds zero extra HBM passes.
    """
    total = x.size
    rows = max(1, pl.cdiv(total, _LANES))
    pad = rows * _LANES - total
    flat = x.reshape(-1).astype(jnp.float32)
    if pad:
        flat = jnp.pad(flat, (0, pad))
    return flat.reshape(rows, _LANES), pad


def _choose_tiling(rows):
    """Pick (block_rows, grid_rows); >=2 blocks when possible (v7x megacore)."""
    if rows <= 8:
        # Single block equal to full array dims (legal regardless of (8,128)).
        return rows, 1
    block_rows = min(_MAX_BLOCK_ROWS, _round_up(pl.cdiv(rows, 2), 8))
    return block_rows, pl.cdiv(rows, block_rows)


def gumbel_forward(x, gumbel_temp=1.0, gumbel_noise=True, training=True,
                   eps=1e-8, seed=0, rng_key=None):
    """Pallas implementation of Gumbel.forward. `x` is NCHW float32.

    Note: `gumbel_temp` does not affect the hard forward value (sign test);
    it is kept for API parity with the PyTorch module.
    """
    del gumbel_temp
    orig_shape = x.shape
    x2, pad = _lane_dense_view(x)
    R, C = x2.shape
    block_rows, grid_rows = _choose_tiling(R)
    block = (block_rows, C)

    cparams = pltpu.CompilerParams(
        dimension_semantics=("parallel",),          # megacore-split on v7x
        vmem_limit_bytes=32 * 1024 * 1024,
    )
    out_shape = jax.ShapeDtypeStruct((R, C), jnp.float32)

    use_noise = bool(training) and bool(gumbel_noise)
    on_tpu = jax.devices()[0].platform == "tpu"

    if use_noise and on_tpu:
        seed_arr = jnp.asarray([seed], dtype=jnp.int32)
        out2 = pl.pallas_call(
            functools.partial(_train_noise_prng_kernel, eps=float(eps)),
            out_shape=out_shape,
            grid_spec=pltpu.PrefetchScalarGridSpec(
                num_scalar_prefetch=1,               # seed lives in SMEM
                grid=(grid_rows,),
                in_specs=[pl.BlockSpec(block, lambda i, seed_ref: (i, 0))],
                out_specs=pl.BlockSpec(block, lambda i, seed_ref: (i, 0)),
            ),
            compiler_params=cparams,
        )(seed_arr, x2)
    elif use_noise:
        # pltpu.prng_* has no lowering off-TPU; draw the (equivalent) logistic
        # noise with jax.random and do the add + sign test in the kernel.
        if rng_key is None:
            rng_key = jax.random.PRNGKey(seed)
        noise = jax.random.logistic(rng_key, (R, C), dtype=jnp.float32)
        out2 = pl.pallas_call(
            _train_noise_host_kernel,
            out_shape=out_shape,
            grid=(grid_rows,),
            in_specs=[pl.BlockSpec(block, lambda i: (i, 0)),
                      pl.BlockSpec(block, lambda i: (i, 0))],
            out_specs=pl.BlockSpec(block, lambda i: (i, 0)),
            compiler_params=cparams,
        )(x2, noise)
    else:
        out2 = pl.pallas_call(
            _sign_kernel,
            out_shape=out_shape,
            grid=(grid_rows,),
            in_specs=[pl.BlockSpec(block, lambda i: (i, 0))],
            out_specs=pl.BlockSpec(block, lambda i: (i, 0)),
            compiler_params=cparams,
        )(x2)

    if pad:
        return out2.reshape(-1)[:x.size].reshape(orig_shape)
    return out2.reshape(orig_shape)   # no extra slice pass in the common case


if __name__ == "__main__":
    key = jax.random.PRNGKey(0)
    # Small shape consistent with a mask-logit tensor: N=2, C=4, H=W=16.
    x = jax.random.normal(key, (2, 4, 16, 16), dtype=jnp.float32)

    # Training path (Gumbel noise + straight-through hard forward value).
    y_train = gumbel_forward(x, gumbel_temp=1.0, gumbel_noise=True,
                             training=True, seed=1234)
    y_train = jax.block_until_ready(y_train)

    # Training path without noise (== sign test).
    y_nonoise = gumbel_forward(x, gumbel_noise=False, training=True)
    y_nonoise = jax.block_until_ready(y_nonoise)

    # Eval path ((x >= 0).float()).
    y_eval = gumbel_forward(x, training=False)
    y_eval = jax.block_until_ready(y_eval)

    ok = True
    # Module's `assert not torch.any(torch.isnan(hard))` — checked host-side.
    ok &= not bool(jnp.any(jnp.isnan(y_train)))
    ok &= not bool(jnp.any(jnp.isnan(y_eval)))
    # Outputs must be strictly binary {0, 1}.
    ok &= bool(jnp.all((y_train == 0.0) | (y_train == 1.0)))
    ok &= bool(jnp.all((y_nonoise == 0.0) | (y_nonoise == 1.0)))
    ok &= bool(jnp.all((y_eval == 0.0) | (y_eval == 1.0)))
    # Eval and no-noise-training paths must equal the reference (x >= 0).float().
    ref = (x >= 0).astype(jnp.float32)
    ok &= bool(jnp.all(y_eval == ref))
    ok &= bool(jnp.all(y_nonoise == ref))
    ok &= y_train.shape == x.shape and y_train.dtype == jnp.float32

    if ok:
        print("KERNEL_OK")
</pallas_src>

<mosaic_0001>
module attributes {stable_mosaic.version = 11 : i64} {
  func.func @_train_noise_host_kernel(%arg0: i32, %arg1: memref<2x1024xf32, #tpu.memory_space<vmem>>, %arg2: memref<2x1024xf32, #tpu.memory_space<vmem>>, %arg3: memref<2x1024xf32, #tpu.memory_space<vmem>>) attributes {dimension_semantics = [#tpu.dimension_semantics<parallel>], iteration_bounds = array<i64: 1>, scalar_prefetch = 0 : i64, scratch_operands = 0 : i64, tpu.core_type = #tpu.core_type<tc>, window_params = [{transform_indices = @transform_0, window_bounds = array<i64: 2, 1024>}, {transform_indices = @transform_1, window_bounds = array<i64: 2, 1024>}, {transform_indices = @transform_2, window_bounds = array<i64: 2, 1024>}]} {
    %c0 = arith.constant 0 : index
    %c0_0 = arith.constant 0 : index
    %0 = vector.load %arg1[%c0, %c0_0] : memref<2x1024xf32, #tpu.memory_space<vmem>>, vector<2x1024xf32>
    %c0_1 = arith.constant 0 : index
    %c0_2 = arith.constant 0 : index
    %1 = vector.load %arg2[%c0_1, %c0_2] : memref<2x1024xf32, #tpu.memory_space<vmem>>, vector<2x1024xf32>
    %2 = arith.addf %0, %1 : vector<2x1024xf32>
    %cst = arith.constant 0.000000e+00 : f32
    %3 = vector.broadcast %cst : f32 to vector<2x1024xf32>
    %4 = arith.cmpf oge, %2, %3 : vector<2x1024xf32>
    %5 = arith.extui %4 : vector<2x1024xi1> to vector<2x1024xi32>
    %6 = arith.sitofp %5 : vector<2x1024xi32> to vector<2x1024xf32>
    %c0_3 = arith.constant 0 : index
    %c0_4 = arith.constant 0 : index
    %7 = vector.load %arg3[%c0_3, %c0_4] : memref<2x1024xf32, #tpu.memory_space<vmem>>, vector<2x1024xf32>
    tpu.vector_store %arg3[%c0_3, %c0_4], %6 {strides = array<i32>} : memref<2x1024xf32, #tpu.memory_space<vmem>>, vector<2x1024xf32>,
    return
  }
  func.func @transform_0(%arg0: i32) -> (i32, i32) {
    %c0_i32 = arith.constant 0 : i32
    %c0_i32_0 = arith.constant 0 : i32
    return %arg0, %c0_i32 : i32, i32
  }
  func.func @transform_1(%arg0: i32) -> (i32, i32) {
    %c0_i32 = arith.constant 0 : i32
    %c0_i32_0 = arith.constant 0 : i32
    return %arg0, %c0_i32 : i32, i32
  }
  func.func @transform_2(%arg0: i32) -> (i32, i32) {
    %c0_i32 = arith.constant 0 : i32
    %c0_i32_0 = arith.constant 0 : i32
    return %arg0, %c0_i32 : i32, i32
  }
}

</mosaic_0001>

<bundles_post_ra>
// kernel: tpu_custom_call.1
= control target key start
LH: loop header
LB: loop body
LE: loop exit
PB: predicated region body
PF: predicated region fallthrough
CT: control target
= control target key end

     0   :  { %7 = vsyncpa [#allocation3], 0  ;;  %s166_s0 = inlined_call_operand.hbm [shape: f32[2,1024], index: 0, kind: input, shape index: {}]   ;;  %s167_s1 = inlined_call_operand.hbm [shape: f32[2,1024], index: 1, kind: input, shape index: {}]   ;;  %s168_s2 = inlined_call_operand.hbm [shape: f32[2,1024], index: 2, kind: output, shape index: {}]  }
   0x1   :  { %8 = vsyncpa [#allocation6], 0 }
   0x2   :  { %9 = vsyncpa [#allocation4], 0  ;;  %s138_s9 = smov [#allocation2]   ;;  %s139_s11 = smov [#allocation5]  }
   0x3   :  { %s16_s10 = sshll.u32 %s138_s9, 4  ;;  %s26_s12 = sshll.u32 %s139_s11, 4  ;;  %s17_s10 = int_to_ptr.vmem [resolvable:$true] %s16_s10  ;;  %s27_s12 = int_to_ptr.vmem [resolvable:$true] %s26_s12 }
   0x4   :  { %s80_s13 = scalar_lea.vmem %s17_s10, 256  ;;  %p85_p1 = scmp.lt.s32.totalorder %s17_s10, %s17_s10 }
   0x5   :  { %p81_p0 = scmp.ne.s32.totalorder %s17_s10, %s80_s13  ;;  %p86_p2 = scmp.lt.s32.totalorder %s80_s13, %s80_s13 }
   0x7   :  { %p87_p3 = por %p86_p2, %p85_p1 }
   0x9   :  { %p88_p4 = pnand %p87_p3, %p81_p0 }
   0xb   :  { %91 = shalt.err (!%p88_p4)
}
   0xc   :  { %19 = dma.hbm_to_vmem [thread:$0]  %s166_s0, 256, %s17_s10, [#allocation3]  }
   0xd   :  { %s100_s16 = scalar_lea.vmem %s27_s12, 256  ;;  %p105_p6 = scmp.lt.s32.totalorder %s27_s12, %s27_s12 }
   0xe   :  { %p101_p5 = scmp.ne.s32.totalorder %s27_s12, %s100_s16  ;;  %p106_p7 = scmp.lt.s32.totalorder %s100_s16, %s100_s16 }
  0x10   :  { %p107_p8 = por %p106_p7, %p105_p6 }
  0x12   :  { %p108_p9 = pnand %p107_p8, %p101_p5 }
  0x14   :  { %111 = shalt.err (!%p108_p9)
}
  0x15   :  { %29 = dma.hbm_to_vmem [thread:$0]  %s167_s1, 256, %s27_s12, [#allocation6]  }
  0x16   :  { %132 = dma.done.wait [#allocation3], 256  }
  0x17   :  { %133 = vsyncadd [#allocation3], 4294967040 }
  0x18   :  { %134 = dma.done.wait [#allocation6], 256  }
  0x19   :  { %135 = vsyncadd [#allocation6], 4294967040  ;;  %v36_v0 = vld [vmem:[#allocation2] sm:$0xff]  ;;  %v38_v1 = vld [vmem:[#allocation5] sm:$0xff]  ;;  %s140_s0 = smov [#allocation7]   ;;  %v141_v6 = vmov 0.0  }
  0x1a   :  { %v37_v2 = vld [vmem:[#allocation2 + $0x8] sm:$0xff]  ;;  %v40_v3 = vadd.f32 %v38_v1, %v36_v0  ;;  %v39_v4 = vld [vmem:[#allocation5 + $0x8] sm:$0xff]  ;;  %s56_s19 = sshll.u32 %s140_s0, 4  ;;  %s57_s19 = int_to_ptr.vmem [resolvable:$true] %s56_s19 }
  0x1b   :  { %v41_v5 = vadd.f32 %v39_v4, %v37_v2  ;;  %s112_s1 = scalar_lea.vmem %s57_s19, 256  ;;  %p117_p11 = scmp.lt.s32.totalorder %s57_s19, %s57_s19 }
  0x1c   :  { %vm42_vm0 = vcmp.ge.f32.partialorder %v40_v3, 0.0  ;;  %p113_p10 = scmp.ne.s32.totalorder %s57_s19, %s112_s1  ;;  %p118_p12 = scmp.lt.s32.totalorder %s112_s1, %s112_s1 }
  0x1d   :  { %v66_v7 = vsel %vm42_vm0, 1.0, %v141_v6  ;;  %vm43_vm1 = vcmp.ge.f32.partialorder %v41_v5, 0.0 }
  0x1e   :  { %48 = vst [vmem:[#allocation7] sm:$0xff] %v66_v7  ;;  %v67_v8 = vsel %vm43_vm1, 1.0, %v141_v6  ;;  %p119_p13 = por %p118_p12, %p117_p11 }
  0x1f   :  { %49 = vst [vmem:[#allocation7 + $0x8] sm:$0xff] %v67_v8 }
  0x20   :  { %p120_p0 = pnand %p119_p13, %p113_p10 }
  0x22   :  { %123 = shalt.err (!%p120_p0)
}
  0x23   :  { %59 = dma.vmem_to_hbm [thread:$0]  %s57_s19, 256, %s168_s2, [#allocation4]  }
  0x24   :  { %136 = dma.done.wait [#allocation4], 256  }
  0x25   :  { %137 = vsyncadd [#allocation4], 4294967040 }
  0x26   :  { %63 = vsyncpa [#allocation3], 1 }
  0x27   :  { %64 = vsyncpa [#allocation6], 1 }
  0x28   :  { %65 = vsyncpa [#allocation4], 1 }

</bundles_post_ra>
